<compile_context>
chip_gen: v7x
topology: tpu7x:2x2x1
jax: 0.10.0
libtpu: 0.0.40
codegen_flags: <defaults>
</compile_context>

<pallas_src>
import math

import jax
import jax.numpy as jnp
from jax.experimental import pallas as pl
from jax.experimental.pallas import tpu as pltpu

MAX_ACTION = 2.0   # stand-in for the global `args.max_action` in the reference code

H_POLICY = 200     # Linear(state_space, 200) trunk width
H_VALUE = 100      # Linear(state_space, 100) value-trunk width
TRUNK_PAD = 384    # 300 -> 384, multiple of 128 (MXU / lane alignment; zero-padded)
OUT_PAD = 128      # packed head output width -> one lane-dense store


def _make_kernel(action_space: int):
    A = action_space

    def kernel(x_ref, wt_ref, bt_ref, wh_ref, bh_ref, out_ref):
        x = x_ref[...]

        # Fused trunk: [policy(200) | value(100) | zero-pad] in ONE MXU matmul,
        # shared ReLU6 on the packed result.
        trunk = jnp.clip(
            jnp.dot(x, wt_ref[...], preferred_element_type=jnp.float32)
            + bt_ref[...],
            0.0, 6.0)

        # Fused heads: block-diagonal (TRUNK_PAD, OUT_PAD) weight ->
        # columns [mu(A) | sigma(A) | value(1) | zero-pad] in ONE MXU matmul.
        head = (jnp.dot(trunk, wh_ref[...], preferred_element_type=jnp.float32)
                + bh_ref[...])

        # Per-column activation select on the single lane-dense slab.
        mu_all = MAX_ACTION * jnp.tanh(head)
        sigma_all = jnp.logaddexp(head, 0.0) + 0.001   # softplus(beta=1) + eps
        lane = jax.lax.broadcasted_iota(jnp.int32, head.shape, dimension=1)
        out = jnp.where(lane < A, mu_all,
                        jnp.where(lane < 2 * A, sigma_all, head))

        out_ref[...] = out.astype(out_ref.dtype)       # one unmasked store

    return kernel


def pack_params(p):
    """Pack the 5 PyTorch-style linears into 2 MXU-friendly operands (host-side, once)."""
    S, H1 = p["w1"].shape
    H2 = p["wv1"].shape[1]
    A = p["wmu"].shape[1]
    assert H1 == H_POLICY and H2 == H_VALUE
    assert 2 * A + 1 <= OUT_PAD, "action_space too large for packed head width"

    w_trunk = jnp.zeros((S, TRUNK_PAD), jnp.float32)
    w_trunk = w_trunk.at[:, :H1].set(p["w1"]).at[:, H1:H1 + H2].set(p["wv1"])
    b_trunk = jnp.zeros((1, TRUNK_PAD), jnp.float32)
    b_trunk = b_trunk.at[:, :H1].set(p["b1"]).at[:, H1:H1 + H2].set(p["bv1"])

    w_head = jnp.zeros((TRUNK_PAD, OUT_PAD), jnp.float32)
    w_head = (w_head
              .at[:H1, :A].set(p["wmu"])
              .at[:H1, A:2 * A].set(p["wsg"])
              .at[H1:H1 + H2, 2 * A:2 * A + 1].set(p["wv2"]))
    b_head = jnp.zeros((1, OUT_PAD), jnp.float32)
    b_head = (b_head
              .at[:, :A].set(p["bmu"])
              .at[:, A:2 * A].set(p["bsg"])
              .at[:, 2 * A:2 * A + 1].set(p["bv2"]))

    return dict(w_trunk=w_trunk, b_trunk=b_trunk,
                w_head=w_head, b_head=b_head, action_space=A)


def mynet_forward(x, packed, *, batch_tile=256):
    B, S = x.shape
    A = packed["action_space"]
    kernel = _make_kernel(A)
    operands = (x, packed["w_trunk"], packed["b_trunk"],
                packed["w_head"], packed["b_head"])
    out_shape = jax.ShapeDtypeStruct((B, OUT_PAD), jnp.float32)

    if B >= batch_tile and B % batch_tile == 0:
        # Large-batch path: tile the batch, keep packed weights resident
        # (constant index_map => no re-DMA), shard grid steps across cores.
        tb = batch_tile
        out = pl.pallas_call(
            kernel,
            out_shape=out_shape,
            grid=(B // tb,),
            in_specs=[
                pl.BlockSpec((tb, S), lambda i: (i, 0)),
                pl.BlockSpec(packed["w_trunk"].shape, lambda i: (0, 0)),
                pl.BlockSpec(packed["b_trunk"].shape, lambda i: (0, 0)),
                pl.BlockSpec(packed["w_head"].shape, lambda i: (0, 0)),
                pl.BlockSpec(packed["b_head"].shape, lambda i: (0, 0)),
            ],
            out_specs=pl.BlockSpec((tb, OUT_PAD), lambda i: (i, 0)),
            compiler_params=pltpu.CompilerParams(
                dimension_semantics=("parallel",)),
        )(*operands)
    else:
        # Small-batch path: grid-less call, every operand a single VMEM block.
        out = pl.pallas_call(kernel, out_shape=out_shape)(*operands)

    mu = out[:, :A]
    sigma = out[:, A:2 * A]
    value = out[:, 2 * A:2 * A + 1]
    return mu, sigma, value


def init_params(key, state_space, action_space):
    """PyTorch nn.Linear init: U(-1/sqrt(fan_in), 1/sqrt(fan_in)).
    Weights stored (in, out); biases (1, out)."""
    def linear(key, fan_in, fan_out):
        kw, kb = jax.random.split(key)
        bound = 1.0 / math.sqrt(fan_in)
        w = jax.random.uniform(kw, (fan_in, fan_out), jnp.float32, -bound, bound)
        b = jax.random.uniform(kb, (1, fan_out), jnp.float32, -bound, bound)
        return w, b

    k1, k2, k3, k4, k5 = jax.random.split(key, 5)
    w1, b1 = linear(k1, state_space, H_POLICY)
    wmu, bmu = linear(k2, H_POLICY, action_space)
    wsg, bsg = linear(k3, H_POLICY, action_space)
    wv1, bv1 = linear(k4, state_space, H_VALUE)
    wv2, bv2 = linear(k5, H_VALUE, 1)
    return dict(w1=w1, b1=b1, wmu=wmu, bmu=bmu, wsg=wsg, bsg=bsg,
                wv1=wv1, bv1=bv1, wv2=wv2, bv2=bv2)


def reference_forward(x, p):
    h = jnp.clip(x @ p["w1"] + p["b1"], 0.0, 6.0)
    mu = MAX_ACTION * jnp.tanh(h @ p["wmu"] + p["bmu"])
    sigma = jnp.logaddexp(h @ p["wsg"] + p["bsg"], 0.0) + 0.001
    v1 = jnp.clip(x @ p["wv1"] + p["bv1"], 0.0, 6.0)
    value = v1 @ p["wv2"] + p["bv2"]
    return mu, sigma, value


# TODO(synk): select_action (Normal sampling) and get_loss are training/host-side
# logic and are intentionally not part of the forward kernel.

if __name__ == "__main__":
    STATE = 16     # state_space
    ACTION = 4     # action_space

    key = jax.random.PRNGKey(0)
    k_data, k_param, k_big = jax.random.split(key, 3)
    params = init_params(k_param, STATE, ACTION)
    packed = pack_params(params)

    # --- small-batch (grid-less) path ---
    x = jax.random.normal(k_data, (8, STATE), jnp.float32)
    mu, sigma, value = mynet_forward(x, packed)
    jax.block_until_ready((mu, sigma, value))

    mu_r, sigma_r, value_r = reference_forward(x, params)
    assert jnp.allclose(mu, mu_r, atol=1e-5), "mu mismatch (small batch)"
    assert jnp.allclose(sigma, sigma_r, atol=1e-5), "sigma mismatch (small batch)"
    assert jnp.allclose(value, value_r, atol=1e-5), "value mismatch (small batch)"

    # --- large-batch (batch-tiled, 'parallel') path ---
    xb = jax.random.normal(k_big, (512, STATE), jnp.float32)
    mu_b, sigma_b, value_b = mynet_forward(xb, packed)
    jax.block_until_ready((mu_b, sigma_b, value_b))

    mu_rb, sigma_rb, value_rb = reference_forward(xb, params)
    assert jnp.allclose(mu_b, mu_rb, atol=1e-5), "mu mismatch (tiled batch)"
    assert jnp.allclose(sigma_b, sigma_rb, atol=1e-5), "sigma mismatch (tiled batch)"
    assert jnp.allclose(value_b, value_rb, atol=1e-5), "value mismatch (tiled batch)"

    print("KERNEL_OK")
</pallas_src>

<mosaic_0001>
module attributes {stable_mosaic.version = 11 : i64} {
  func.func @kernel(%arg0: memref<8x16xf32, #tpu.memory_space<vmem>>, %arg1: memref<16x384xf32, #tpu.memory_space<vmem>>, %arg2: memref<1x384xf32, #tpu.memory_space<vmem>>, %arg3: memref<384x128xf32, #tpu.memory_space<vmem>>, %arg4: memref<1x128xf32, #tpu.memory_space<vmem>>, %arg5: memref<8x128xf32, #tpu.memory_space<vmem>>) attributes {dimension_semantics = [], scalar_prefetch = 0 : i64, scratch_operands = 0 : i64, tpu.core_type = #tpu.core_type<tc>} {
    %c0 = arith.constant 0 : index
    %c0_0 = arith.constant 0 : index
    %0 = vector.load %arg0[%c0, %c0_0] : memref<8x16xf32, #tpu.memory_space<vmem>>, vector<8x16xf32>
    %c0_1 = arith.constant 0 : index
    %c0_2 = arith.constant 0 : index
    %1 = vector.load %arg1[%c0_1, %c0_2] : memref<16x384xf32, #tpu.memory_space<vmem>>, vector<16x384xf32>
    %cst = arith.constant dense<0.000000e+00> : vector<8x384xf32>
    %2 = tpu.matmul %0, %1, %cst {dimension_numbers = #tpu.dot_dimension_numbers<[1], [0], [0], [1], [0, 0, 1, 1], [], []>} : vector<8x16xf32>, vector<16x384xf32>, vector<8x384xf32> -> vector<8x384xf32>
    %c0_3 = arith.constant 0 : index
    %c0_4 = arith.constant 0 : index
    %3 = vector.load %arg2[%c0_3, %c0_4] : memref<1x384xf32, #tpu.memory_space<vmem>>, vector<1x384xf32>
    %4 = vector.broadcast %3 : vector<1x384xf32> to vector<8x384xf32>
    %5 = arith.addf %2, %4 : vector<8x384xf32>
    %cst_5 = arith.constant 0.000000e+00 : f32
    %cst_6 = arith.constant 6.000000e+00 : f32
    %6 = vector.broadcast %cst_5 : f32 to vector<8x384xf32>
    %7 = arith.maximumf %6, %5 : vector<8x384xf32>
    %8 = vector.broadcast %cst_6 : f32 to vector<8x384xf32>
    %9 = arith.minimumf %8, %7 : vector<8x384xf32>
    %c0_7 = arith.constant 0 : index
    %c0_8 = arith.constant 0 : index
    %10 = vector.load %arg3[%c0_7, %c0_8] : memref<384x128xf32, #tpu.memory_space<vmem>>, vector<384x128xf32>
    %cst_9 = arith.constant dense<0.000000e+00> : vector<8x128xf32>
    %11 = tpu.matmul %9, %10, %cst_9 {dimension_numbers = #tpu.dot_dimension_numbers<[1], [0], [0], [1], [0, 0, 1, 1], [], []>} : vector<8x384xf32>, vector<384x128xf32>, vector<8x128xf32> -> vector<8x128xf32>
    %c0_10 = arith.constant 0 : index
    %c0_11 = arith.constant 0 : index
    %12 = vector.load %arg4[%c0_10, %c0_11] : memref<1x128xf32, #tpu.memory_space<vmem>>, vector<1x128xf32>
    %13 = vector.broadcast %12 : vector<1x128xf32> to vector<8x128xf32>
    %14 = arith.addf %11, %13 : vector<8x128xf32>
    %15 = math.tanh %14 : vector<8x128xf32>
    %cst_12 = arith.constant 2.000000e+00 : f32
    %16 = vector.broadcast %cst_12 : f32 to vector<8x128xf32>
    %17 = arith.mulf %16, %15 : vector<8x128xf32>
    %cst_13 = arith.constant 0.000000e+00 : f32
    %18 = vector.broadcast %cst_13 : f32 to vector<8x128xf32>
    %19 = arith.maximumf %14, %18 : vector<8x128xf32>
    %20 = vector.broadcast %cst_13 : f32 to vector<8x128xf32>
    %21 = arith.subf %14, %20 : vector<8x128xf32>
    %22 = arith.cmpf one, %21, %21 : vector<8x128xf32>
    %23 = vector.broadcast %cst_13 : f32 to vector<8x128xf32>
    %24 = arith.addf %14, %23 : vector<8x128xf32>
    %25 = math.absf %21 : vector<8x128xf32>
    %cst_14 = arith.constant 0.000000e+00 : f32
    %26 = vector.broadcast %cst_14 : f32 to vector<8x128xf32>
    %27 = arith.subf %26, %25 : vector<8x128xf32>
    %28 = math.exp %27 : vector<8x128xf32>
    %29 = math.log1p %28 : vector<8x128xf32>
    %30 = arith.addf %19, %29 : vector<8x128xf32>
    %31 = arith.select %22, %24, %30 : vector<8x128xi1>, vector<8x128xf32>
    %cst_15 = arith.constant 1.000000e-03 : f32
    %32 = vector.broadcast %cst_15 : f32 to vector<8x128xf32>
    %33 = arith.addf %31, %32 : vector<8x128xf32>
    %34 = tpu.iota {dimensions = array<i32: 1>} : vector<8x128xi32>
    %c4_i32 = arith.constant 4 : i32
    %35 = vector.broadcast %c4_i32 : i32 to vector<8x128xi32>
    %36 = arith.cmpi slt, %34, %35 : vector<8x128xi32>
    %c8_i32 = arith.constant 8 : i32
    %37 = vector.broadcast %c8_i32 : i32 to vector<8x128xi32>
    %38 = arith.cmpi slt, %34, %37 : vector<8x128xi32>
    %39 = arith.select %38, %33, %14 : vector<8x128xi1>, vector<8x128xf32>
    %40 = arith.select %36, %17, %39 : vector<8x128xi1>, vector<8x128xf32>
    %c0_16 = arith.constant 0 : index
    %c0_17 = arith.constant 0 : index
    %41 = vector.load %arg5[%c0_16, %c0_17] : memref<8x128xf32, #tpu.memory_space<vmem>>, vector<8x128xf32>
    tpu.vector_store %arg5[%c0_16, %c0_17], %40 {strides = array<i32>} : memref<8x128xf32, #tpu.memory_space<vmem>>, vector<8x128xf32>,
    return
  }
}

</mosaic_0001>

<bundles_post_ra>
// kernel: tpu_custom_call.1
= control target key start
LH: loop header
LB: loop body
LE: loop exit
PB: predicated region body
PF: predicated region fallthrough
CT: control target
= control target key end

     0   :  { %10 = vsyncpa [#allocation3], 0  ;;  %s856_s0 = inlined_call_operand.hbm [shape: f32[8,16], index: 0, kind: input, shape index: {}]   ;;  %s857_s1 = inlined_call_operand.hbm [shape: f32[16,384], index: 1, kind: input, shape index: {}]   ;;  %s858_s2 = inlined_call_operand.vmem [shape: f32[1,384], index: 2, kind: input, shape index: {}]   ;;  %s859_s3 = inlined_call_operand.hbm [shape: f32[384,128], index: 3, kind: input, shape index: {}]   ;;  %s860_s4 = inlined_call_operand.vmem [shape: f32[1,128], index: 4, kind: input, shape index: {}]   ;;  %s861_s5 = inlined_call_operand.hbm [shape: f32[8,128], index: 5, kind: output, shape index: {}]  }
   0x1   :  { %11 = vsyncpa [#allocation6], 0 }
   0x2   :  { %12 = vsyncpa [#allocation4], 0  ;;  %s748_s18 = smov [#allocation5]   ;;  %s654_s22 = scalar_lea.hbm %s857_s1, 768 }
   0x3   :  { %s28_s19 = sshll.u32 %s748_s18, 4  ;;  %p655_p0 = scmp.ne.s32.totalorder %s857_s1, %s654_s22  ;;  %s29_s19 = int_to_ptr.vmem [resolvable:$true] %s28_s19 }
   0x4   :  { %p658_p1 = scmp.lt.u32.totalorder %s654_s22, %s857_s1 }
   0x6   :  { %p660_p2 = pnand %p658_p1, %p655_p0 }
   0x8   :  { %663 = shalt.err (!%p660_p2)
}
   0x9   :  { %s664_s27 = scalar_lea.vmem %s29_s19, 768  ;;  %p669_p4 = scmp.lt.s32.totalorder %s29_s19, %s29_s19 }
   0xa   :  { %p665_p3 = scmp.ne.s32.totalorder %s29_s19, %s664_s27  ;;  %p670_p5 = scmp.lt.s32.totalorder %s664_s27, %s664_s27 }
   0xc   :  { %p671_p6 = por %p670_p5, %p669_p4 }
   0xe   :  { %p672_p7 = pnand %p671_p6, %p665_p3 }
  0x10   :  { %675 = shalt.err (!%p672_p7)
}
  0x11   :  { %s749_s28 = smov 384   ;;  %s750_s29 = smov 24  }
  0x12   :  { %34 = dma.hbm_to_vmem [thread:$0]  %s857_s1, 768, %s29_s19, [#allocation6], %s749_s28, %s749_s28, %s750_s29  }
  0x13   :  { %s751_s7 = smov [#allocation2]   ;;  %s752_s9 = smov [#allocation7]  }
  0x14   :  { %s19_s8 = sshll.u32 %s751_s7, 4  ;;  %s42_s10 = sshll.u32 %s752_s9, 4  ;;  %s20_s8 = int_to_ptr.vmem [resolvable:$true] %s19_s8  ;;  %s43_s10 = int_to_ptr.vmem [resolvable:$true] %s42_s10 }
  0x15   :  { %s676_s13 = scalar_lea.hbm %s856_s0, 128 }
  0x16   :  { %p677_p8 = scmp.ne.s32.totalorder %s856_s0, %s676_s13  ;;  %p680_p9 = scmp.lt.u32.totalorder %s676_s13, %s856_s0 }
  0x18   :  { %p682_p10 = pnand %p680_p9, %p677_p8 }
  0x1a   :  { %685 = shalt.err (!%p682_p10)
}
  0x1b   :  { %s686_s1 = scalar_lea.vmem %s20_s8, 128  ;;  %p691_p12 = scmp.lt.s32.totalorder %s20_s8, %s20_s8 }
  0x1c   :  { %p687_p11 = scmp.ne.s32.totalorder %s20_s8, %s686_s1  ;;  %p692_p13 = scmp.lt.s32.totalorder %s686_s1, %s686_s1 }
  0x1e   :  { %p693_p0 = por %p692_p13, %p691_p12 }
  0x20   :  { %p694_p1 = pnand %p693_p0, %p687_p11 }
  0x22   :  { %697 = shalt.err (!%p694_p1)
}
  0x23   :  { %22 = dma.hbm_to_vmem [thread:$0]  %s856_s0, 128, %s20_s8, [#allocation3]  }
  0x24   :  { %s698_s22 = scalar_lea.hbm %s859_s3, 6144 }
  0x25   :  { %p699_p2 = scmp.ne.s32.totalorder %s859_s3, %s698_s22  ;;  %p702_p3 = scmp.lt.u32.totalorder %s698_s22, %s859_s3 }
  0x27   :  { %p704_p4 = pnand %p702_p3, %p699_p2 }
  0x29   :  { %707 = shalt.err (!%p704_p4)
}
  0x2a   :  { %s708_s27 = scalar_lea.vmem %s43_s10, 6144  ;;  %p713_p6 = scmp.lt.s32.totalorder %s43_s10, %s43_s10 }
  0x2b   :  { %p709_p5 = scmp.ne.s32.totalorder %s43_s10, %s708_s27  ;;  %p714_p7 = scmp.lt.s32.totalorder %s708_s27, %s708_s27 }
  0x2d   :  { %p715_p8 = por %p714_p7, %p713_p6 }
  0x2f   :  { %p716_p9 = pnand %p715_p8, %p709_p5 }
  0x31   :  { %719 = shalt.err (!%p716_p9)
}
  0x32   :  { %s753_s0 = smov 128   ;;  %s754_s28 = smov 8  }
  0x33   :  { %48 = dma.hbm_to_vmem [thread:$0]  %s859_s3, 6144, %s43_s10, [#allocation6], %s753_s0, %s753_s0, %s754_s28  }
  0x34   :  { %742 = dma.done.wait [#allocation3], 128  }
  0x35   :  { %743 = vsyncadd [#allocation3], 4294967168 }
  0x36   :  { %744 = dma.done.wait [#allocation6], 6912  }
  0x37   :  { %745 = vsyncadd [#allocation6], 4294960384  ;;  %v755_v0 = vmov 0.0   ;;  %v756_v1 = vmov 0.0|0.0   ;;  %vm757_vm0 = vmmov 0   ;;  %v62_v2 = vld [vmem:[#allocation5 + $0x8] sm:$0xff] }
  0x38   :  { %152 = vmatprep.mubr.f32.mxu0 %v755_v0  ;;  %578 = vmatprep.subr.bf16.mxu1 %v756_v1  ;;  %v65_v3 = vld [vmem:[#allocation5 + $0x20] sm:$0xff]  ;;  %v64_v6 = vld [vmem:[#allocation5 + $0x18] sm:$0xff]  ;;  %v63_v7 = vld [vmem:[#allocation5 + $0x10] sm:$0xff]  ;;  %vm84_vm1 = vcmask 130048  }
  0x39   :  { %536 = vmatprep.mubr.msk.f32.mxu1 %vm757_vm0, %v755_v0  ;;  %v61_v4 = vld [vmem:[#allocation5] sm:$0xff]  ;;  %v574_v5 = vpack.c.bf16 %v65_v3, %v62_v2  ;;  %v66_v9 = vld [vmem:[#allocation5 + $0x28] sm:$0xff]  ;;  %v251_v10 = vld [vmem:[#allocation7 + $0x80] sm:$0xff] }
  0x3a   :  { %v576_v8 = vpack.c.bf16 %v64_v6, %v61_v4  ;;  %v252_v11 = vld [vmem:[#allocation7 + $0x88] sm:$0xff]  ;;  %v579_v12 = vpack.c.bf16 %v66_v9, %v63_v7  ;;  %v235_v14 = vld [vmem:[#allocation7] sm:$0xff]  ;;  %v253_v16 = vld [vmem:[#allocation7 + $0x90] sm:$0xff] }
  0x3b   :  { %575 = vmatprep.subr.bf16.mxu0 %v574_v5  ;;  %v581_v13 = vpack.c.bf16 %v252_v11, %v251_v10  ;;  %v236_v15 = vld [vmem:[#allocation7 + $0x8] sm:$0xff]  ;;  %v254_v19 = vld [vmem:[#allocation7 + $0x98] sm:$0xff]  ;;  %v237_v20 = vld [vmem:[#allocation7 + $0x10] sm:$0xff] }
  0x3c   :  { %577 = vmatpush1.bf16.msra.mxu0 %v576_v8  ;;  %v60_v17 = vld [vmem:[#allocation2] sm:$0xff]  ;;  %v583_v18 = vpack.c.bf16 %v236_v15, %v235_v14  ;;  %580 = vmatpush3.bf16.msra.mxu1 %v579_v12  ;;  %v585_v21 = vpack.c.bf16 %v254_v19, %v253_v16  ;;  %v238_v22 = vld [vmem:[#allocation7 + $0x18] sm:$0xff]  ;;  %v267_v23 = vld [vmem:[#allocation7 + $0x100] sm:$0xff] }
  0x3d   :  { %582 = vmatprep.subr.bf16.mxu0 %v581_v13  ;;  %v268_v24 = vld [vmem:[#allocation7 + $0x108] sm:$0xff]  ;;  %613 = vmatprep.subr.bf16.mxu1 %v756_v1  ;;  %v255_v26 = vld [vmem:[#allocation7 + $0xa0] sm:$0xff]  ;;  %v269_v28 = vld [vmem:[#allocation7 + $0x110] sm:$0xff]  ;;  %v587_v30 = vpack.c.bf16 %v238_v22, %v237_v20 }
  0x3e   :  { %v614_v25 = vpack.c.bf16 %v268_v24, %v267_v23  ;;  %v256_v27 = vld [vmem:[#allocation7 + $0xa8] sm:$0xff]  ;;  %v270_v29 = vld [vmem:[#allocation7 + $0x118] sm:$0xff]  ;;  %v239_v32 = vld [vmem:[#allocation7 + $0x20] sm:$0xff] }
  0x3f   :  { %474 = vmatmul.mubr.msk.f32.vlgmr.msra.gmra.mrb[0].mxu0 %vm84_vm1, %v60_v17  ;;  %537 = vmatmul.mubr.msk.f32.vlgmr.msra.gmra.mrb[0].mxu1 %vm84_vm1, %v60_v17  ;;  %v589_v31 = vpack.c.bf16 %v256_v27, %v255_v26  ;;  %v240_v33 = vld [vmem:[#allocation7 + $0x28] sm:$0xff]  ;;  %v617_v34 = vpack.c.bf16 %v270_v29, %v269_v28  ;;  %v257_v35 = vld [vmem:[#allocation7 + $0xb0] sm:$0xff]  ;;  %v258_v36 = vld [vmem:[#allocation7 + $0xb8] sm:$0xff] }
  0x40   :  { %584 = vmatpush3.bf16.msra.mxu0 %v583_v18  ;;  %615 = vmatpush3.bf16.msra.mxu1 %v614_v25  ;;  %v271_v37 = vld [vmem:[#allocation7 + $0x120] sm:$0xff]  ;;  %v272_v38 = vld [vmem:[#allocation7 + $0x128] sm:$0xff]  ;;  %v591_v39 = vpack.c.bf16 %v240_v33, %v239_v32  ;;  %v593_v40 = vpack.c.bf16 %v258_v36, %v257_v35  ;;  %v241_v41 = vld [vmem:[#allocation7 + $0x30] sm:$0xff] }
  0x41   :  { %586 = vmatprep.subr.bf16.mxu0 %v585_v21  ;;  %616 = vmatprep.subr.bf16.mxu1 %v756_v1  ;;  %v242_v42 = vld [vmem:[#allocation7 + $0x38] sm:$0xff]  ;;  %v620_v43 = vpack.c.bf16 %v272_v38, %v271_v37  ;;  %v259_v44 = vld [vmem:[#allocation7 + $0xc0] sm:$0xff]  ;;  %v260_v45 = vld [vmem:[#allocation7 + $0xc8] sm:$0xff]  ;;  %v69_v21 = vlaneseq }
  0x42   :  { %571 = vmatprep.mubr.msk.f32.mxu1 %vm757_vm0, %v755_v0  ;;  %v273_v46 = vld [vmem:[#allocation7 + $0x130] sm:$0xff]  ;;  %v274_v47 = vld [vmem:[#allocation7 + $0x138] sm:$0xff]  ;;  %v595_v48 = vpack.c.bf16 %v242_v42, %v241_v41  ;;  %v597_v49 = vpack.c.bf16 %v260_v45, %v259_v44  ;;  %v243_v50 = vld [vmem:[#allocation7 + $0x40] sm:$0xff] }
  0x43   :  { %v244_v51 = vld [vmem:[#allocation7 + $0x48] sm:$0xff]  ;;  %v623_v52 = vpack.c.bf16 %v274_v47, %v273_v46  ;;  %v261_v53 = vld [vmem:[#allocation7 + $0xd0] sm:$0xff]  ;;  %v262_v54 = vld [vmem:[#allocation7 + $0xd8] sm:$0xff]  ;;  %v70_v22 = vshrl.u32 %v69_v21, 7 }
  0x44   :  { %588 = vmatpush3.bf16.msra.mxu0 %v587_v30  ;;  %618 = vmatpush3.bf16.msra.mxu1 %v617_v34  ;;  %v275_v55 = vld [vmem:[#allocation7 + $0x140] sm:$0xff]  ;;  %v276_v56 = vld [vmem:[#allocation7 + $0x148] sm:$0xff]  ;;  %v599_v57 = vpack.c.bf16 %v244_v51, %v243_v50  ;;  %v601_v58 = vpack.c.bf16 %v262_v54, %v261_v53  ;;  %v245_v59 = vld [vmem:[#allocation7 + $0x50] sm:$0xff] }
  0x45   :  { %590 = vmatprep.subr.bf16.mxu0 %v589_v31  ;;  %619 = vmatprep.subr.bf16.mxu1 %v756_v1  ;;  %v246_v60 = vld [vmem:[#allocation7 + $0x58] sm:$0xff]  ;;  %v626_v61 = vpack.c.bf16 %v276_v56, %v275_v55  ;;  %v263_v63 = vld [vmem:[#allocation7 + $0xe0] sm:$0xff]  ;;  %v264_v0 = vld [vmem:[#allocation7 + $0xe8] sm:$0xff]  ;;  %v71_v23 = vsub.s32 0, %v70_v22  ;;  %v75_v25 = vsub.s32 1, %v70_v22  ;;  %v79_v26 = vsub.s32 2, %v70_v22 }
  0x46   :  { %v603_v62 = vpack.c.bf16 %v246_v60, %v245_v59  ;;  %v605_v2 = vpack.c.bf16 %v264_v0, %v263_v63  ;;  %v247_v3 = vld [vmem:[#allocation7 + $0x60] sm:$0xff]  ;;  %v248_v4 = vld [vmem:[#allocation7 + $0x68] sm:$0xff]  ;;  %v277_v5 = vld [vmem:[#allocation7 + $0x150] sm:$0xff] }
  0x47   :  { %v607_v6 = vpack.c.bf16 %v248_v4, %v247_v3  ;;  %v278_v7 = vld [vmem:[#allocation7 + $0x158] sm:$0xff]  ;;  %v265_v9 = vld [vmem:[#allocation7 + $0xf0] sm:$0xff]  ;;  %v279_v14 = vld [vmem:[#allocation7 + $0x160] sm:$0xff] }
  0x48   :  { %592 = vmatpush3.bf16.msra.mxu0 %v591_v39  ;;  %621 = vmatpush3.bf16.msra.mxu1 %v620_v43  ;;  %v629_v8 = vpack.c.bf16 %v278_v7, %v277_v5  ;;  %v266_v10 = vld [vmem:[#allocation7 + $0xf8] sm:$0xff]  ;;  %v249_v12 = vld [vmem:[#allocation7 + $0x70] sm:$0xff]  ;;  %v280_v16 = vld [vmem:[#allocation7 + $0x168] sm:$0xff] }
  0x49   :  { %594 = vmatprep.subr.bf16.mxu0 %v593_v40  ;;  %622 = vmatprep.subr.bf16.mxu1 %v756_v1  ;;  %v609_v11 = vpack.c.bf16 %v266_v10, %v265_v9  ;;  %v250_v13 = vld [vmem:[#allocation7 + $0x78] sm:$0xff]  ;;  %v632_v17 = vpack.c.bf16 %v280_v16, %v279_v14  ;;  %v281_v18 = vld [vmem:[#allocation7 + $0x170] sm:$0xff]  ;;  %v67_v24 = vld [vmem:[%s858_s2] sm:$0x7] }
  0x4a   :  { %v611_v15 = vpack.c.bf16 %v250_v13, %v249_v12  ;;  %v282_v19 = vld [vmem:[#allocation7 + $0x178] sm:$0xff]  ;;  %v72_v27 = vrot.slane %v67_v24, %v71_v23  ;;  %v76_v28 = vrot.slane %v67_v24, %v75_v25  ;;  %v80_v29 = vrot.slane %v67_v24, %v79_v26  ;;  %v476_v46 = vld [vmem:[%s860_s4] ss:$0 sm:$0xff]  ;;  %s758_s4 = smov [#allocation8]  }
  0x4b   :  { %v635_v20 = vpack.c.bf16 %v282_v19, %v281_v18  ;;  %s464_s8 = sshll.u32 %s758_s4, 4  ;;  %s465_s8 = int_to_ptr.vmem [resolvable:$true] %s464_s8 }
  0x4c   :  { %596 = vmatpush3.bf16.msra.mxu0 %v595_v48  ;;  %624 = vmatpush3.bf16.msra.mxu1 %v623_v52  ;;  %s720_s9 = scalar_lea.vmem %s465_s8, 128  ;;  %p725_p11 = scmp.lt.s32.totalorder %s465_s8, %s465_s8 }
  0x4d   :  { %598 = vmatprep.subr.bf16.mxu0 %v597_v49  ;;  %625 = vmatprep.subr.bf16.mxu1 %v756_v1  ;;  %p721_p10 = scmp.ne.s32.totalorder %s465_s8, %s720_s9  ;;  %p726_p12 = scmp.lt.s32.totalorder %s720_s9, %s720_s9 }
  0x4f   :  { %p727_p13 = por %p726_p12, %p725_p11 }
  0x50   :  { %600 = vmatpush3.bf16.msra.mxu0 %v599_v57  ;;  %627 = vmatpush3.bf16.msra.mxu1 %v626_v61 }
  0x51   :  { %602 = vmatprep.subr.bf16.mxu0 %v601_v58  ;;  %628 = vmatprep.subr.bf16.mxu1 %v756_v1  ;;  %p728_p0 = pnand %p727_p13, %p721_p10 }
  0x54   :  { %604 = vmatpush3.bf16.msra.mxu0 %v603_v62  ;;  %630 = vmatpush3.bf16.msra.mxu1 %v629_v8  ;;  %v452_v62 = vand.u32 127, %v69_v21 }
  0x55   :  { %606 = vmatprep.subr.bf16.mxu0 %v605_v2  ;;  %631 = vmatprep.subr.bf16.mxu1 %v756_v1 }
  0x56   :  { %vm454_vm4 = vcmp.lt.s32.totalorder %v452_v62, 8  ;;  %vm453_vm5 = vcmp.lt.s32.totalorder %v452_v62, 4 }
  0x58   :  { %608 = vmatpush3.bf16.msra.mxu0 %v607_v6  ;;  %633 = vmatpush3.bf16.msra.mxu1 %v632_v17 }
  0x59   :  { %610 = vmatprep.subr.bf16.mxu0 %v609_v11  ;;  %634 = vmatprep.subr.bf16.mxu1 %v756_v1 }
  0x5c   :  { %612 = vmatpush3.bf16.msra.mxu0 %v611_v15  ;;  %636 = vmatpush3.bf16.msra.mxu1 %v635_v20 }
 0x112   :  { %v154_v30 = vpop.f32.mrb[0].mxu0  ;;  %v225_v33 = vpop.f32.mrb[0].mxu1 }
 0x113   :  { %v155_v31 = vadd.f32 %v154_v30, %v72_v27  ;;  %v156_v32 = vpop.f32.mrb[1].mxu0  ;;  %v226_v1 = vadd.f32 %v225_v33, %v80_v29  ;;  %v538_v35 = vpop.f32.mrb[1].mxu1 }
 0x114   :  { %v157_v34 = vadd.f32 %v156_v32, %v76_v28 }
 0x115   :  { %v229_v36 = vmax.f32 %v155_v31, 0.0  ;;  %v231_v38 = vmax.f32 %v226_v1, 0.0 }
 0x116   :  { %v230_v37 = vmax.f32 %v157_v34, 0.0 }
 0x117   :  { %v234_v40 = vmin.f32 %v231_v38, 6.0  ;;  %v232_v41 = vmin.f32 %v229_v36, 6.0 }
 0x118   :  { %v233_v39 = vmin.f32 %v230_v37, 6.0 }
 0x119   :  { %572 = vmatmul.mubr.f32.vlgmr.msra.gmra.mrb[2].mxu1 %v234_v40 }
 0x11a   :  { %354 = vmatprep.mubr.f32.mxu0 %v233_v39 }
 0x11b   :  { %355 = vmatmul.mubr.f32.vlgmr.msra.gmra.mrb[2].mxu0 %v232_v41 }
 0x1ec   :  { %v426_v42 = vpop.f32.mrb[2].mxu1 }
 0x1ed   :  { %v573_v44 = vpop.f32.mrb[3].mxu1 }
 0x1ee   :  { %v512_v43 = vpop.f32.mrb[2].mxu0 }
 0x1ef   :  { %v513_v45 = vpop.f32.mrb[3].mxu0 }
 0x1f0   :  { %v514_v47 = vadd.f32 %v513_v45, %v512_v43 }
 0x1f2   :  { %v357_v48 = vadd.f32 %v514_v47, %v476_v46 }
 0x1f4   :  { %v427_v49 = vadd.f32 %v426_v42, %v357_v48 }
 0x1f6   :  { %v435_v50 = vand.u32 2147483647, %v427_v49  ;;  %v432_v61 = vmax.f32 %v427_v49, 0.0  ;;  %vm433_vm3 = vcmp.ne.f32.partialorder %v427_v49, %v427_v49 }
 0x1f8   :  { %v436_v51 = vsub.f32 0.0, %v435_v50 }
 0x1fa   :  { %v437_v52 = vmul.f32 1.442695, %v436_v51 }
 0x1fc   :  { %648 = vpow2.f32 %v437_v52 }
 0x206   :  { %v649_v53 = vpop.eup %648 }
 0x207   :  { %v439_v54 = vadd.f32 1.0, %v649_v53  ;;  %v442_v55 = vmul.f32 -0.5, %v649_v53  ;;  %v445_v57 = vand.u32 2147483647, %v649_v53 }
 0x209   :  { %650 = vlog2.f32 %v439_v54  ;;  %v443_v56 = vadd.f32 1.0, %v442_v55  ;;  %vm446_vm2 = vcmp.lt.f32.partialorder %v445_v57, 0.0004427343 }
 0x20a   :  { %652 = vtanh.f32 %v427_v49 }
 0x20b   :  { %v444_v60 = vmul.f32 %v649_v53, %v443_v56 }
 0x213   :  { %v651_v58 = vpop.eup %650 }
 0x214   :  { %v441_v59 = vmul.f32 0.6931472, %v651_v58  ;;  %v653_v2 = vpop.eup %652 }
 0x215   :  { %v431_v5 = vmul.f32 2.0, %v653_v2 }
 0x216   :  { %v447_v63 = vsel %vm446_vm2, %v444_v60, %v441_v59 }
 0x217   :  { %v448_v0 = vadd.f32 %v447_v63, %v432_v61 }
 0x219   :  { %v449_v3 = vsel %vm433_vm3, %v427_v49, %v448_v0 }
 0x21a   :  { %v450_v4 = vadd.f32 0.001, %v449_v3 }
 0x21c   :  { %v455_v6 = vsel %vm454_vm4, %v450_v4, %v427_v49 }
 0x21d   :  { %v456_v7 = vsel %vm453_vm5, %v431_v5, %v455_v6 }
 0x21e   :  { %457 = vst [vmem:[#allocation8] sm:$0xff] %v456_v7 }
 0x21f   :  { %731 = shalt.err (!%p728_p0)
}
 0x220   :  { %s732_s12 = scalar_lea.hbm %s861_s5, 128 }
 0x221   :  { %p733_p1 = scmp.ne.s32.totalorder %s861_s5, %s732_s12  ;;  %p736_p2 = scmp.lt.u32.totalorder %s732_s12, %s861_s5 }
 0x223   :  { %p738_p3 = pnand %p736_p2, %p733_p1 }
 0x225   :  { %741 = shalt.err (!%p738_p3)
}
 0x226   :  { %467 = dma.vmem_to_hbm [thread:$0]  %s465_s8, 128, %s861_s5, [#allocation4]  }
 0x227   :  { %746 = dma.done.wait [#allocation4], 128  }
 0x228   :  { %747 = vsyncadd [#allocation4], 4294967168 }
 0x229   :  { %471 = vsyncpa [#allocation3], 1 }
 0x22a   :  { %472 = vsyncpa [#allocation6], 1 }
 0x22b   :  { %473 = vsyncpa [#allocation4], 1 }

</bundles_post_ra>
